<compile_context>
chip_gen: v7x
topology: tpu7x:2x2x1
jax: 0.10.0
libtpu: 0.0.40
codegen_flags: <defaults>
</compile_context>

<pallas_src>
import numpy as np
import jax
import jax.numpy as jnp
from jax import lax
from jax.experimental import pallas as pl
from jax.experimental.pallas import tpu as pltpu


def make_kernel(k):
    """Mirror of the PyTorch make_kernel (used by the pure-JAX reference)."""
    k = jnp.asarray(k, dtype=jnp.float32)
    if k.ndim == 1:
        k = k[None, :] * k[:, None]
    k = k / jnp.sum(k)
    return k


def _make_blur_body(*, Hc, Wc, Hp, Wp, out_h, out_w,
                    pad_top, pad_bot, pad_left, pad_right, nc_blk,
                    v_taps=None, h_taps=None, w2d=None):
    """Kernel body factory. FIR taps are compile-time Python float constants."""
    f32 = jnp.float32

    def pad_h(val):
        # Zero-pad the H (sublane) axis in registers (no ref stores).
        parts = []
        if pad_top > 0:
            parts.append(jnp.zeros((nc_blk, pad_top, val.shape[2]), f32))
        parts.append(val)
        if pad_bot > 0:
            parts.append(jnp.zeros((nc_blk, pad_bot, val.shape[2]), f32))
        return jnp.concatenate(parts, axis=1) if len(parts) > 1 else val

    def pad_w(val):
        # Zero-pad the W (lane) axis in registers (no ref stores).
        parts = []
        if pad_left > 0:
            parts.append(jnp.zeros((nc_blk, val.shape[1], pad_left), f32))
        parts.append(val)
        if pad_right > 0:
            parts.append(jnp.zeros((nc_blk, val.shape[1], pad_right), f32))
        return jnp.concatenate(parts, axis=2) if len(parts) > 1 else val

    if w2d is None:
        kh, kw = len(v_taps), len(h_taps)

        def kernel(x_ref, o_ref):
            # (nc_blk, Hc, Wc) -> cast + H-pad: (nc_blk, Hp, Wc)
            xv = pad_h(x_ref[...].astype(f32))
            # Vertical 1-D pass: sublane-offset slices, one fused expression.
            t = v_taps[0] * xv[:, 0:out_h, :]
            for i in range(1, kh):
                t = t + v_taps[i] * xv[:, i:i + out_h, :]
            # W-pad the intermediate: (nc_blk, out_h, Wp)
            tw = pad_w(t)
            # Horizontal 1-D pass: lane-offset slices (XLU shifts), fused.
            acc = h_taps[0] * tw[:, :, 0:out_w]
            for j in range(1, kw):
                acc = acc + h_taps[j] * tw[:, :, j:j + out_w]
            o_ref[...] = acc.astype(o_ref.dtype)   # single full-tile store
    else:
        kh, kw = len(w2d), len(w2d[0])

        def kernel(x_ref, o_ref):
            xp = pad_w(pad_h(x_ref[...].astype(f32)))   # (nc_blk, Hp, Wp)
            acc = None
            for i in range(kh):
                for j in range(kw):
                    term = w2d[i][j] * xp[:, i:i + out_h, j:j + out_w]
                    acc = term if acc is None else acc + term
            o_ref[...] = acc.astype(o_ref.dtype)

    return kernel


def _vmem_capacity_bytes():
    try:
        fn = getattr(pltpu, "get_tpu_info", None)
        if fn is None:
            return 0
        return int(getattr(fn(), "vmem_capacity_bytes", 0) or 0)
    except Exception:
        return 0


def blur(x, kernel, pad, upsample_factor=1):
    """upfirdn2d(x, make_kernel(kernel), up=1, down=1, pad=pad) on NCHW input."""
    kk = np.asarray(kernel, dtype=np.float64)
    if kk.ndim == 1:
        # Separable: make_kernel(k) == outer(k/sum(k), k/sum(k)).
        a = kk / kk.sum()
        if upsample_factor > 1:
            a = a * upsample_factor
        a = a[::-1]                                  # upfirdn2d uses true convolution
        v_taps = h_taps = tuple(float(t) for t in a)
        w2d = None
        kh = kw = len(a)
    else:
        w = kk / kk.sum()
        if upsample_factor > 1:
            w = w * (upsample_factor ** 2)
        w = w[::-1, ::-1]
        w2d = tuple(tuple(float(t) for t in row) for row in w)
        v_taps = h_taps = None
        kh, kw = w.shape

    N, C, H, W = x.shape
    NC = N * C
    pad0, pad1 = pad

    # Negative padding == cropping: done in the wrapper (cheap fused slice);
    # positive padding is applied inside the kernel in registers.
    crop0, crop1 = max(0, -pad0), max(0, -pad1)
    xc = x[:, :, crop0:H - crop1, crop0:W - crop1]
    Hc, Wc = H - crop0 - crop1, W - crop0 - crop1
    pad_top = pad_left = max(0, pad0)
    pad_bot = pad_right = max(0, pad1)
    Hp, Wp = Hc + pad_top + pad_bot, Wc + pad_left + pad_right
    out_h, out_w = Hp - kh + 1, Wp - kw + 1
    assert out_h > 0 and out_w > 0, "blur output would be empty"

    # Free relayout: (N, C, Hc, Wc) -> (N*C, Hc, Wc). W sits on the lane axis,
    # H on sublanes, channel planes on the untiled leading (grid) axis, so no
    # HBM transpose or lane padding is needed.
    xr = xc.reshape(NC, Hc, Wc)

    in_es = jnp.dtype(x.dtype).itemsize
    # Honest per-plane VMEM estimate: double-buffered in/out blocks plus every
    # f32 temporary the body materializes (cast, padded values, pass results).
    tmp_f32 = Hc * Wc + Hp * Wc + Hp * Wp + out_h * Wp + out_h * out_w
    per_plane = 2 * Hc * Wc * in_es + 2 * out_h * out_w * in_es + 4 * tmp_f32

    vmem_cap = _vmem_capacity_bytes()
    if vmem_cap >= (100 << 20):            # v5e / v6e: 128 MiB physical VMEM
        budget, limit_cap = 56 << 20, 100 << 20
    else:                                  # v7x (64 MiB per core) or unknown
        budget, limit_cap = 28 << 20, 48 << 20

    # Largest divisor of NC that fits the budget; keep >= 2 grid blocks when
    # NC >= 2 (keeps both v7x TensorCores busy and overlaps DMA with compute).
    cap = max(1, min(NC, budget // max(per_plane, 1)))
    if NC >= 2:
        cap = min(cap, (NC + 1) // 2)
    nc_blk = 1
    for d in range(1, int(cap) + 1):
        if NC % d == 0:
            nc_blk = d
    # TODO(synk): if per_plane alone exceeds the budget (very large planes), an
    # H-tiled grid axis with a (kh-1)-row halo (manual DMA) would be needed.

    kernel_body = _make_blur_body(
        Hc=Hc, Wc=Wc, Hp=Hp, Wp=Wp, out_h=out_h, out_w=out_w,
        pad_top=pad_top, pad_bot=pad_bot, pad_left=pad_left, pad_right=pad_right,
        nc_blk=nc_blk, v_taps=v_taps, h_taps=h_taps, w2d=w2d)

    vmem_limit = int(min(limit_cap, max(32 << 20, nc_blk * per_plane + (8 << 20))))

    out = pl.pallas_call(
        kernel_body,
        out_shape=jax.ShapeDtypeStruct((NC, out_h, out_w), x.dtype),
        grid_spec=pltpu.PrefetchScalarGridSpec(
            num_scalar_prefetch=0,
            grid=(NC // nc_blk,),
            in_specs=[pl.BlockSpec((nc_blk, Hc, Wc), lambda i: (i, 0, 0))],
            out_specs=pl.BlockSpec((nc_blk, out_h, out_w), lambda i: (i, 0, 0))),
        compiler_params=pltpu.CompilerParams(
            dimension_semantics=("parallel",),   # independent plane blocks (v7x megacore)
            vmem_limit_bytes=vmem_limit),
    )(xr)

    return out.reshape(N, C, out_h, out_w)


def blur_reference(x, kernel, pad, upsample_factor=1):
    """Pure-JAX reference: depthwise conv2d with flipped kernel on padded input."""
    w = make_kernel(kernel)
    if upsample_factor > 1:
        w = w * (upsample_factor ** 2)
    w_flip = w[::-1, ::-1]
    N, C, H, W = x.shape
    pad0, pad1 = pad
    xp = lax.pad(x.astype(jnp.float32), jnp.float32(0.0),
                 [(0, 0, 0), (0, 0, 0), (pad0, pad1, 0), (pad0, pad1, 0)])
    rhs = jnp.tile(w_flip[None, None], (C, 1, 1, 1))  # (C, 1, kh, kw)
    out = lax.conv_general_dilated(
        xp, rhs, window_strides=(1, 1), padding="VALID",
        dimension_numbers=("NCHW", "OIHW", "NCHW"),
        feature_group_count=C)
    return out.astype(x.dtype)


if __name__ == "__main__":
    key = jax.random.PRNGKey(0)
    N, C, H, W = 2, 4, 16, 16
    x = jax.random.normal(key, (N, C, H, W), dtype=jnp.float32)

    # Typical Blur instantiation in StyleGAN2 discriminators:
    blur_kernel_1d = [1.0, 3.0, 3.0, 1.0]
    pad = (2, 1)  # size-preserving: 16 + 2 + 1 - 4 + 1 = 16

    out = jax.block_until_ready(blur(x, blur_kernel_1d, pad))
    ref = blur_reference(x, blur_kernel_1d, pad)
    assert out.shape == (N, C, H, W), out.shape
    assert jnp.allclose(out, ref, atol=1e-5, rtol=1e-5), "mismatch vs reference"

    # Second sanity check: odd tap count, rectangular plane, NC not a power of 2.
    x2 = jax.random.normal(jax.random.PRNGKey(1), (1, 3, 8, 16), dtype=jnp.float32)
    out2 = jax.block_until_ready(blur(x2, [1.0, 2.0, 1.0], (1, 1)))
    ref2 = blur_reference(x2, [1.0, 2.0, 1.0], (1, 1))
    assert out2.shape == (1, 3, 8, 16), out2.shape
    assert jnp.allclose(out2, ref2, atol=1e-5, rtol=1e-5), "mismatch vs reference (2)"

    print("KERNEL_OK")
</pallas_src>

<mosaic_0001>
module attributes {stable_mosaic.version = 11 : i64} {
  func.func @kernel(%arg0: i32, %arg1: memref<4x16x16xf32, #tpu.memory_space<vmem>>, %arg2: memref<4x16x16xf32, #tpu.memory_space<vmem>>) attributes {dimension_semantics = [#tpu.dimension_semantics<parallel>], iteration_bounds = array<i64: 2>, scalar_prefetch = 0 : i64, scratch_operands = 0 : i64, tpu.core_type = #tpu.core_type<tc>, window_params = [{transform_indices = @transform_0, window_bounds = array<i64: 4, 16, 16>}, {transform_indices = @transform_1, window_bounds = array<i64: 4, 16, 16>}]} {
    %c0 = arith.constant 0 : index
    %c0_0 = arith.constant 0 : index
    %c0_1 = arith.constant 0 : index
    %0 = vector.load %arg1[%c0, %c0_0, %c0_1] : memref<4x16x16xf32, #tpu.memory_space<vmem>>, vector<4x16x16xf32>
    %cst = arith.constant 0.000000e+00 : f32
    %1 = vector.broadcast %cst : f32 to vector<4x2x16xf32>
    %cst_2 = arith.constant 0.000000e+00 : f32
    %2 = vector.broadcast %cst_2 : f32 to vector<4x1x16xf32>
    %3 = tpu.concatenate %1, %0, %2 in 1 : vector<4x2x16xf32>, vector<4x16x16xf32>, vector<4x1x16xf32> -> vector<4x19x16xf32>
    %4 = vector.extract_strided_slice %3 {offsets = [0, 0, 0], sizes = [4, 16, 16], strides = [1, 1, 1]} : vector<4x19x16xf32> to vector<4x16x16xf32>
    %cst_3 = arith.constant 1.250000e-01 : f32
    %5 = vector.broadcast %cst_3 : f32 to vector<4x16x16xf32>
    %6 = arith.mulf %5, %4 : vector<4x16x16xf32>
    %7 = vector.extract_strided_slice %3 {offsets = [0, 1, 0], sizes = [4, 16, 16], strides = [1, 1, 1]} : vector<4x19x16xf32> to vector<4x16x16xf32>
    %cst_4 = arith.constant 3.750000e-01 : f32
    %8 = vector.broadcast %cst_4 : f32 to vector<4x16x16xf32>
    %9 = arith.mulf %8, %7 : vector<4x16x16xf32>
    %10 = arith.addf %6, %9 : vector<4x16x16xf32>
    %11 = vector.extract_strided_slice %3 {offsets = [0, 2, 0], sizes = [4, 16, 16], strides = [1, 1, 1]} : vector<4x19x16xf32> to vector<4x16x16xf32>
    %cst_5 = arith.constant 3.750000e-01 : f32
    %12 = vector.broadcast %cst_5 : f32 to vector<4x16x16xf32>
    %13 = arith.mulf %12, %11 : vector<4x16x16xf32>
    %14 = arith.addf %10, %13 : vector<4x16x16xf32>
    %15 = vector.extract_strided_slice %3 {offsets = [0, 3, 0], sizes = [4, 16, 16], strides = [1, 1, 1]} : vector<4x19x16xf32> to vector<4x16x16xf32>
    %cst_6 = arith.constant 1.250000e-01 : f32
    %16 = vector.broadcast %cst_6 : f32 to vector<4x16x16xf32>
    %17 = arith.mulf %16, %15 : vector<4x16x16xf32>
    %18 = arith.addf %14, %17 : vector<4x16x16xf32>
    %cst_7 = arith.constant 0.000000e+00 : f32
    %19 = vector.broadcast %cst_7 : f32 to vector<4x16x2xf32>
    %cst_8 = arith.constant 0.000000e+00 : f32
    %20 = vector.broadcast %cst_8 : f32 to vector<4x16x1xf32>
    %21 = tpu.concatenate %19, %18, %20 in 2 : vector<4x16x2xf32>, vector<4x16x16xf32>, vector<4x16x1xf32> -> vector<4x16x19xf32>
    %22 = vector.extract_strided_slice %21 {offsets = [0, 0, 0], sizes = [4, 16, 16], strides = [1, 1, 1]} : vector<4x16x19xf32> to vector<4x16x16xf32>
    %cst_9 = arith.constant 1.250000e-01 : f32
    %23 = vector.broadcast %cst_9 : f32 to vector<4x16x16xf32>
    %24 = arith.mulf %23, %22 : vector<4x16x16xf32>
    %25 = vector.extract_strided_slice %21 {offsets = [0, 0, 1], sizes = [4, 16, 16], strides = [1, 1, 1]} : vector<4x16x19xf32> to vector<4x16x16xf32>
    %cst_10 = arith.constant 3.750000e-01 : f32
    %26 = vector.broadcast %cst_10 : f32 to vector<4x16x16xf32>
    %27 = arith.mulf %26, %25 : vector<4x16x16xf32>
    %28 = arith.addf %24, %27 : vector<4x16x16xf32>
    %29 = vector.extract_strided_slice %21 {offsets = [0, 0, 2], sizes = [4, 16, 16], strides = [1, 1, 1]} : vector<4x16x19xf32> to vector<4x16x16xf32>
    %cst_11 = arith.constant 3.750000e-01 : f32
    %30 = vector.broadcast %cst_11 : f32 to vector<4x16x16xf32>
    %31 = arith.mulf %30, %29 : vector<4x16x16xf32>
    %32 = arith.addf %28, %31 : vector<4x16x16xf32>
    %33 = vector.extract_strided_slice %21 {offsets = [0, 0, 3], sizes = [4, 16, 16], strides = [1, 1, 1]} : vector<4x16x19xf32> to vector<4x16x16xf32>
    %cst_12 = arith.constant 1.250000e-01 : f32
    %34 = vector.broadcast %cst_12 : f32 to vector<4x16x16xf32>
    %35 = arith.mulf %34, %33 : vector<4x16x16xf32>
    %36 = arith.addf %32, %35 : vector<4x16x16xf32>
    %c0_13 = arith.constant 0 : index
    %c0_14 = arith.constant 0 : index
    %c0_15 = arith.constant 0 : index
    %37 = vector.load %arg2[%c0_13, %c0_14, %c0_15] : memref<4x16x16xf32, #tpu.memory_space<vmem>>, vector<4x16x16xf32>
    tpu.vector_store %arg2[%c0_13, %c0_14, %c0_15], %36 {strides = array<i32>} : memref<4x16x16xf32, #tpu.memory_space<vmem>>, vector<4x16x16xf32>,
    return
  }
  func.func @transform_0(%arg0: i32) -> (i32, i32, i32) {
    %c0_i32 = arith.constant 0 : i32
    %c0_i32_0 = arith.constant 0 : i32
    %c0_i32_1 = arith.constant 0 : i32
    return %arg0, %c0_i32, %c0_i32_0 : i32, i32, i32
  }
  func.func @transform_1(%arg0: i32) -> (i32, i32, i32) {
    %c0_i32 = arith.constant 0 : i32
    %c0_i32_0 = arith.constant 0 : i32
    %c0_i32_1 = arith.constant 0 : i32
    return %arg0, %c0_i32, %c0_i32_0 : i32, i32, i32
  }
}

</mosaic_0001>

<bundles_post_ra>
// kernel: tpu_custom_call.1
= control target key start
LH: loop header
LB: loop body
LE: loop exit
PB: predicated region body
PF: predicated region fallthrough
CT: control target
= control target key end

     0   :  { %6 = vsyncpa [#allocation3], 0  ;;  %s1083_s0 = inlined_call_operand.hbm [shape: f32[8,16,16], index: 0, kind: input, shape index: {}]   ;;  %s1084_s1 = inlined_call_operand.hbm [shape: f32[8,16,16], index: 1, kind: output, shape index: {}]  }
   0x1   :  { %8 = vsyncpa [#allocation3 + $0x1], 0 }
   0x2   :  { %9 = vsyncpa [#allocation4], 0 }
   0x3   :  { %11 = vsyncpa [#allocation4 + $0x1], 0  ;;  %s813_s6 = smov 0   ;;  %s815_s7 = smov 0  }
   0x4   :  { %s817_s8 = smov 0   ;;  %s819_s9 = smov 0  }
   0x5 LB: > { %s834_s10 = sadd.s32 4294967295, %s791_s9   ;;  %s621_s11 = sadd.s32 4294967294, %s791_s9   ;;  %s791_s9 = sphi %s819_s9, %s1097_s9   ;;  %s787_s8 = sphi %s817_s8, %s1096_s8   ;;  %s783_s7 = sphi %s815_s7, %s1095_s7   ;;  %s779_s6 = sphi %s813_s6, %s1094_s6  }
   0x6   : > { %s838_s12 = sadd.s32 1, %s791_s9   ;;  %s24_s13 = sadd.s32 1, %s787_s8 }
   0x7   : > { %s21_s14 = ssub.s32 %s791_s9, %s838_s12  ;;  %p31_p0 = scmp.ne.s32.totalorder %s787_s8, %s783_s7 }
   0x8   : > { %p22_p1 = scmp.eq.s32.totalorder %s21_s14, 0  ;;  %p32_p2 = scmp.eq.s32.totalorder %s791_s9, 0 }
   0x9   : > { %p37_p3 = scmp.ne.s32.totalorder %s783_s7, %s779_s6  ;;  %p38_p4 = scmp.eq.s32.totalorder %s834_s10, 0 }
   0xa   : > { %s850_s15 = scalar_select %p22_p1, %s787_s8, %s24_s13  }
   0xb   : > { %p852_p5 = por %p32_p2, %p31_p0  ;;  %p856_p6 = por %p38_p4, %p37_p3 }
   0xc   : > { %p61_p7 = scmp.eq.s32.totalorder %s834_s10, 1  ;;  %p67_p8 = scmp.eq.s32.totalorder %s621_s11, 1 }
   0xd   : > { %p653_p10 = scmp.lt.s32.totalorder %s791_s9, 2  ;;  %s87_s20 = sand.u32 1, %s787_s8  }
   0xe   : > { %p863_p11 = por %p61_p7, %p31_p0  ;;  %p867_p12 = por %p67_p8, %p37_p3 }
   0xf   : > { %s638_s21 = sshll.u32 %s791_s9, 10  ;;  %s624_s22 = sshll.u32 %s87_s20, 6 }
  0x10   : > { %s1088_s18 = scalar_select %p863_p11, 1, 0 }
  0x11   : > { %s1089_s19 = scalar_select %p867_p12, 1, 0 }
  0x12   : > { %s876_s25 = scalar_lea.hbm %s1083_s0, %s638_s21  ;;  %s91_s26 = scalar_lea.vmem [#allocation2], %s624_s22 }
  0x13   : > { %s99_s27 = sshll.u32 %s91_s26, 4  ;;  %p880_p13 = pnand %p653_p10, %p852_p5  ;;  %s884_s27 = int_to_ptr.vmem [resolvable:$true] %s99_s27 }
  0x14   : > { %s886_s29 = scalar_lea.sflag [#allocation3], %s87_s20  ;;  %s695_s30 = scalar_lea.hbm %s876_s25, 1024 }
  0x15   : > { %p696_p0 = scmp.ne.s32.totalorder %s876_s25, %s695_s30  ;;  %p697_p1 = pneg %p880_p13 }
  0x16   : > { %s700_s4 = scalar_lea.hbm %s1083_s0, 2048  ;;  %p701_p4 = scmp.lt.u32.totalorder %s876_s25, %s1083_s0 }
  0x17   : > { %p698_p2 = pnand %p697_p1, %p696_p0  ;;  %p702_p5 = scmp.lt.u32.totalorder %s700_s4, %s695_s30 }
  0x18   : > { %p704_p8 = scmp.lt.u32.totalorder %s695_s30, %s876_s25 }
  0x19   : > { %p699_p3 = pneg %p698_p2  ;;  %p703_p7 = por %p702_p5, %p701_p4 }
  0x1b   : > { %p705_p10 = por %p704_p8, %p703_p7 }
  0x1d   : > { %p706_p9 = pnand %p705_p10, %p699_p3 }
  0x1f   : > { %709 = shalt.err (!%p706_p9)
}
  0x20   : > { %s710_s13 = scalar_lea.vmem %s884_s27, 1024  ;;  %s793_s14 = smov [#allocation2]  }
  0x21   : > { %p711_p0 = scmp.ne.s32.totalorder %s884_s27, %s710_s13  ;;  %s715_s16 = sshll.u32 %s793_s14, 4  ;;  %s716_s16 = int_to_ptr.vmem [resolvable:$false] %s715_s16 }
  0x22   : > { %s717_s20 = scalar_lea.vmem %s716_s16, 2048  ;;  %p718_p11 = scmp.lt.s32.totalorder %s884_s27, %s716_s16 }
  0x23   : > { %p713_p2 = pnand %p711_p0, %p697_p1  ;;  %p719_p4 = scmp.lt.s32.totalorder %s717_s20, %s710_s13 }
  0x25   : > { %p714_p12 = pneg %p713_p2  ;;  %p720_p5 = por %p719_p4, %p718_p11 }
  0x27   : > { %p721_p7 = pnand %p720_p5, %p714_p12 }
  0x29   : > { %724 = shalt.err (!%p721_p7)
}
  0x2a   : > { %s794_s21 = smov 128   ;;  %s795_s22 = smov 8  }
  0x2b   : > { %648 = dma.hbm_to_vmem [thread:$0]  (!%p880_p13), %s876_s25, 1024, %s884_s27, %s886_s29, %s794_s21, %s794_s21, %s795_s22  }
  0x2c   : > { %p628_p9 = scmp.ge.s32.totalorder %s791_s9, 1  ;;  %p107_p1 = scmp.lt.s32.totalorder %s791_s9, 3 }
  0x2e   : > { %p108_p3 = pnand %p628_p9, %p107_p1 }
  0x2f   : > { %s917_s23 = sand.u32 (!%p108_p3), 1, %s783_s7  }
  0x30   : > { %111 = sbr.rel (%p108_p3) target bundleno = 377 (0x179), region = 24  ;;  %s629_s24 = sshll.u32 (!%p108_p3), %s917_s23, 6 }
  0x31   : > { %s114_s26 = scalar_lea.sflag (!%p108_p3), [#allocation3], %s917_s23  ;;  %s923_s30 = scalar_lea.vmem (!%p108_p3), [#allocation2], %s629_s24 }
  0x37   : > { %770 = dma.done.wait (%p856_p6), %s114_s26, 1024  }
  0x38   : > { %772 = vsyncadd (%p856_p6), %s114_s26, 4294966272  ;;  %v138_v0 = vld [vmem:[%s923_s30] sm:$0xff]  ;;  %v139_v1 = vld [vmem:[%s923_s30 + $0x8] sm:$0xff]  ;;  %vm154_vm0 = vcmask 1041408   ;;  %vm219_vm1 = vcmask 1046528   ;;  %vm256_vm2 = vcmask 1045504  }
  0x39   : > { %v140_v2 = vld [vmem:[%s923_s30 + $0x10] sm:$0xff]  ;;  %v155_v3 = vrot.slane %v138_v0, 6  ;;  %v156_v4 = vrot.slane %v139_v1, 6  ;;  %v141_v5 = vld [vmem:[%s923_s30 + $0x18] sm:$0xff]  ;;  %v142_v7 = vld [vmem:[%s923_s30 + $0x20] sm:$0xff]  ;;  %vm309_vm3 = vcmask 1044480  }
  0x3a   : > { %v158_v6 = vrot.slane %v140_v2, 6  ;;  %v935_v8 = vld [vmem:[%s923_s30 + $0x28] sm:$0xff]  ;;  %v159_v9 = vrot.slane %v141_v5, 6  ;;  %v161_v10 = vrot.slane %v142_v7, 6  ;;  %s796_s17 = smov 2   ;;  %vm378_vm4 = vcmask 15360  }
  0x3b   : > { %v162_v11 = vrot.slane %v935_v8, 6  ;;  %v157_v12 = vsel %vm154_vm0, %v155_v3, %v156_v4  ;;  %v179_v13 = vsel %vm154_vm0, 0.0, %v155_v3  ;;  %v183_v15 = vsel %vm154_vm0, %v156_v4, 0.0  ;;  %s797_s25 = smov 127   ;;  %s798_s27 = smov 126  }
  0x3c   : > { %v180_v14 = vsel %vm154_vm0, 0.0, %v158_v6  ;;  %v187_v16 = vmul.f32 0.125, %v179_v13  ;;  %v188_v17 = vmul.f32 0.125, %v157_v12  ;;  %v195_v18 = vmul.f32 0.375, %v179_v13  ;;  %s799_s28 = smov 125   ;;  %s1014_s29 = scalar_lea.vmem [#allocation5], %s629_s24 }
  0x3d   : > { %v196_v19 = vmul.f32 0.375, %v157_v12  ;;  %v160_v20 = vsel %vm154_vm0, %v158_v6, %v159_v9  ;;  %v189_v21 = vmul.f32 0.125, %v180_v14  ;;  %v198_v22 = vmul.f32 0.375, %v180_v14  ;;  %s640_s2 = sshll.u32 %s834_s10, 10  ;;  %s548_s3 = sshll.u32 %s1014_s29, 4  ;;  %s1035_s3 = int_to_ptr.vmem [resolvable:$true] %s548_s3 }
  0x3e   : > { %v197_v23 = vmul.f32 0.375, %v183_v15  ;;  %v220_v24 = vrot.slane %v195_v18, 1  ;;  %v257_v26 = vrot.slane %v195_v18, 2  ;;  %v310_v28 = vrot.slane %v187_v16, 3  ;;  %s1033_s11 = scalar_lea.hbm %s1084_s1, %s640_s2  ;;  %s534_s10 = scalar_lea.sflag [#allocation4], %s917_s23 }
  0x3f   : > { %v221_v25 = vrot.slane %v196_v19, 1  ;;  %v258_v27 = vrot.slane %v196_v19, 2  ;;  %v311_v29 = vrot.slane %v188_v17, 3  ;;  %v190_v30 = vmul.f32 0.125, %v160_v20  ;;  %v145_v19 = vld [vmem:[%s923_s30 + $0x38] sm:$0xff]  ;;  %s725_s13 = scalar_lea.vmem %s1035_s3, 1024 }
  0x40   : > { %v199_v31 = vmul.f32 0.375, %v160_v20  ;;  %v225_v34 = vrot.slane %v198_v22, 1  ;;  %v262_v35 = vrot.slane %v198_v22, 2  ;;  %v315_v40 = vrot.slane %v189_v21, 3  ;;  %p726_p6 = scmp.ne.s32.totalorder %s1035_s3, %s725_s13  ;;  %p1091_p11 = scmp.ne.s32.totalorder %s1088_s18, 0 }
  0x41   : > { %v222_v32 = vsel %vm219_vm1, %v220_v24, %v221_v25  ;;  %v259_v33 = vsel %vm256_vm2, %v257_v26, %v258_v27  ;;  %v312_v37 = vsel %vm309_vm3, %v310_v28, %v311_v29  ;;  %v316_v41 = vrot.slane %v190_v30, 3  ;;  %s800_s14 = smov [#allocation5]  }
  0x42   : > { %v248_v36 = vadd.f32 %v222_v32, %v187_v16  ;;  %v226_v38 = vrot.slane %v199_v31, 1  ;;  %v263_v39 = vrot.slane %v199_v31, 2  ;;  %v223_v42 = vrot.slane %v197_v23, 1  ;;  %p727_p12 = pnand %p726_p6, %p1091_p11  ;;  %s729_s16 = sshll.u32 %s800_s14, 4  ;;  %s730_s16 = int_to_ptr.vmem [resolvable:$false] %s729_s16 }
  0x43   : > { %v260_v43 = vrot.slane %v197_v23, 2  ;;  %v293_v47 = vmul.f32 0.125, %v183_v15  ;;  %v317_v49 = vsel %vm309_vm3, %v315_v40, %v316_v41  ;;  %v184_v55 = vsel %vm154_vm0, %v159_v9, 0.0  ;;  %v144_v9 = vld [vmem:[%s923_s30 + $0x30] sm:$0xff]  ;;  %s731_s20 = scalar_lea.vmem %s730_s16, 2048  ;;  %p732_p8 = scmp.lt.s32.totalorder %s1035_s3, %s730_s16 }
  0x44   : > { %v285_v44 = vadd.f32 %v259_v33, %v248_v36  ;;  %v227_v45 = vsel %vm219_vm1, %v225_v34, %v226_v38  ;;  %v264_v46 = vsel %vm256_vm2, %v262_v35, %v263_v39  ;;  %v224_v50 = vsel %vm219_vm1, %v221_v25, %v223_v42  ;;  %p728_p13 = pneg %p727_p12  ;;  %p733_p10 = scmp.lt.s32.totalorder %s731_s20, %s725_s13 }
  0x45   : > { %v250_v48 = vadd.f32 %v227_v45, %v189_v21  ;;  %v261_v51 = vsel %vm256_vm2, %v258_v27, %v260_v43  ;;  %v249_v53 = vadd.f32 %v224_v50, %v188_v17  ;;  %v313_v54 = vrot.slane %v293_v47, 3 }
  0x46   : > { %v338_v52 = vadd.f32 %v312_v37, %v285_v44  ;;  %v200_v57 = vmul.f32 0.375, %v184_v55  ;;  %v294_v58 = vmul.f32 0.125, %v184_v55  ;;  %v163_v59 = vsel %vm154_vm0, %v161_v10, %v162_v11  ;;  %p734_p0 = por %p733_p10, %p732_p8 }
  0x47   : > { %v287_v56 = vadd.f32 %v264_v46, %v250_v48  ;;  %v286_v60 = vadd.f32 %v261_v51, %v249_v53  ;;  %v314_v61 = vsel %vm309_vm3, %v311_v29, %v313_v54  ;;  %v181_v62 = vsel %vm154_vm0, 0.0, %v161_v10 }
  0x48   : > { %354 = vrot.lane.b32.xlu0 %v338_v52, %s796_s17  ;;  %v192_v63 = vmul.f32 0.125, %v163_v59  ;;  %v228_v1 = vrot.slane %v200_v57, 1  ;;  %v265_v2 = vrot.slane %v200_v57, 2  ;;  %v318_v3 = vrot.slane %v294_v58, 3  ;;  %p735_p2 = pnand %p734_p0, %p728_p13 }
  0x49   : > { %v340_v0 = vadd.f32 %v317_v49, %v287_v56  ;;  %v339_v4 = vadd.f32 %v314_v61, %v286_v60  ;;  %v191_v5 = vmul.f32 0.125, %v181_v62  ;;  %v201_v6 = vmul.f32 0.375, %v181_v62 }
  0x4a   : > { %v202_v7 = vmul.f32 0.375, %v163_v59  ;;  %v229_v12 = vsel %vm219_vm1, %v226_v38, %v228_v1  ;;  %v266_v13 = vsel %vm256_vm2, %v263_v39, %v265_v2  ;;  %v319_v14 = vsel %vm309_vm3, %v316_v41, %v318_v3 }
  0x4b   : > { %358 = vrot.lane.b32.xlu1 %v340_v0, %s796_s17  ;;  %v321_v10 = vrot.slane %v192_v63, 3  ;;  %v251_v15 = vadd.f32 %v229_v12, %v190_v30  ;;  %v230_v16 = vrot.slane %v201_v6, 1  ;;  %v267_v18 = vrot.slane %v201_v6, 2 }
  0x4c   : > { %356 = vrot.lane.b32.xlu0 %v339_v4, %s796_s17  ;;  %v231_v17 = vrot.slane %v202_v7, 1  ;;  %v268_v20 = vrot.slane %v202_v7, 2  ;;  %v320_v21 = vrot.slane %v191_v5, 3  ;;  %v185_v22 = vsel %vm154_vm0, %v162_v11, 0.0 }
  0x4d   : > { %v164_v23 = vrot.slane %v144_v9, 6  ;;  %v288_v24 = vadd.f32 %v266_v13, %v251_v15  ;;  %v203_v26 = vmul.f32 0.375, %v185_v22  ;;  %v295_v27 = vmul.f32 0.125, %v185_v22 }
  0x4e   : > { %v232_v25 = vsel %vm219_vm1, %v230_v16, %v231_v17  ;;  %v269_v29 = vsel %vm256_vm2, %v267_v18, %v268_v20  ;;  %v322_v30 = vsel %vm309_vm3, %v320_v21, %v321_v10  ;;  %v165_v31 = vrot.slane %v145_v19, 6 }
  0x4f   : > { %v252_v28 = vadd.f32 %v232_v25, %v191_v5  ;;  %v341_v32 = vadd.f32 %v319_v14, %v288_v24  ;;  %v233_v33 = vrot.slane %v203_v26, 1  ;;  %v270_v34 = vrot.slane %v203_v26, 2 }
  0x50   : > { %v323_v35 = vrot.slane %v295_v27, 3  ;;  %v166_v8 = vsel %vm154_vm0, %v164_v23, %v165_v31  ;;  %v182_v11 = vsel %vm154_vm0, 0.0, %v164_v23  ;;  %v186_v37 = vsel %vm154_vm0, %v165_v31, 0.0 }
  0x51   : > { %v289_v36 = vadd.f32 %v269_v29, %v252_v28  ;;  %360 = vrot.lane.b32.xlu1 %v341_v32, %s796_s17  ;;  %v234_v38 = vsel %vm219_vm1, %v231_v17, %v233_v33  ;;  %v271_v39 = vsel %vm256_vm2, %v268_v20, %v270_v34  ;;  %v193_v41 = vmul.f32 0.125, %v182_v11 }
  0x52   : > { %v324_v40 = vsel %vm309_vm3, %v321_v10, %v323_v35  ;;  %v253_v43 = vadd.f32 %v234_v38, %v192_v63  ;;  %v194_v44 = vmul.f32 0.125, %v166_v8  ;;  %v204_v45 = vmul.f32 0.375, %v182_v11 }
  0x53   : > { %v342_v42 = vadd.f32 %v322_v30, %v289_v36  ;;  %v205_v46 = vmul.f32 0.375, %v166_v8  ;;  %v325_v47 = vrot.slane %v193_v41, 3  ;;  %v206_v48 = vmul.f32 0.375, %v186_v37 }
  0x54   : > { %v296_v49 = vmul.f32 0.125, %v186_v37  ;;  %v290_v50 = vadd.f32 %v271_v39, %v253_v43  ;;  %v235_v51 = vrot.slane %v204_v45, 1  ;;  %v272_v52 = vrot.slane %v204_v45, 2 }
  0x55   : > { %362 = vrot.lane.b32.xlu0 %v342_v42, %s796_s17  ;;  %v326_v53 = vrot.slane %v194_v44, 3  ;;  %v236_v54 = vrot.slane %v205_v46, 1  ;;  %v273_v55 = vrot.slane %v205_v46, 2  ;;  %v238_v56 = vrot.slane %v206_v48, 1 }
  0x56   : > { %v275_v57 = vrot.slane %v206_v48, 2  ;;  %v343_v58 = vadd.f32 %v324_v40, %v290_v50  ;;  %v328_v59 = vrot.slane %v296_v49, 3  ;;  %vm387_vm5 = vcmask 146432  }
  0x57   : > { %v237_v60 = vsel %vm219_vm1, %v235_v51, %v236_v54  ;;  %v274_v61 = vsel %vm256_vm2, %v272_v52, %v273_v55  ;;  %v239_v62 = vsel %vm219_vm1, %v236_v54, %v238_v56  ;;  %v327_v2 = vsel %vm309_vm3, %v325_v47, %v326_v53 }
  0x58   : > { %v276_v63 = vsel %vm256_vm2, %v273_v55, %v275_v57  ;;  %364 = vrot.lane.b32.xlu1 %v343_v58, %s796_s17  ;;  %v254_v0 = vadd.f32 %v237_v60, %v193_v41  ;;  %v255_v1 = vadd.f32 %v239_v62, %v194_v44  ;;  %v329_v3 = vsel %vm309_vm3, %v326_v53, %v328_v59 }
  0x59   : > { %vm524_vm6 = vcmask 130048  }
  0x5a   : > { %v291_v4 = vadd.f32 %v274_v61, %v254_v0  ;;  %v292_v5 = vadd.f32 %v276_v63, %v255_v1 }
  0x5c   : > { %v344_v6 = vadd.f32 %v327_v2, %v291_v4  ;;  %v345_v7 = vadd.f32 %v329_v3, %v292_v5 }
  0x5e   : > { %366 = vrot.lane.b32.xlu0 %v344_v6, %s796_s17  ;;  %368 = vrot.lane.b32.xlu1 %v345_v7, %s796_s17 }
  0xba   : > { %v355_v9 = vpop.permute.xlu0 %354 }
  0xbb   : > { %v379_v12 = vsel %vm378_vm4, 0.0, %v355_v9 }
  0xbc   : > { %v388_v13 = vsel %vm387_vm5, %v379_v12, 0.0 }
  0xbd   : > { %v404_v14 = vmul.f32 0.375, %v388_v13  ;;  %v359_v10 = vpop.permute.xlu1 %358  ;;  %v396_v40 = vmul.f32 0.125, %v388_v13 }
  0xbe   : > { %v381_v15 = vsel %vm378_vm4, 0.0, %v359_v10  ;;  %v357_v16 = vpop.permute.xlu0 %356 }
  0xbf   : > { %v390_v17 = vsel %vm387_vm5, %v381_v15, 0.0  ;;  %v380_v18 = vsel %vm378_vm4, 0.0, %v357_v16  ;;  %420 = vrot.lane.b32.xlu0 %v404_v14, %s797_s25 }
  0xc0   : > { %v406_v19 = vmul.f32 0.375, %v390_v17  ;;  %v389_v20 = vsel %vm387_vm5, %v380_v18, 0.0  ;;  %v398_v42 = vmul.f32 0.125, %v390_v17 }
  0xc1   : > { %v405_v21 = vmul.f32 0.375, %v389_v20  ;;  %v397_v41 = vmul.f32 0.125, %v389_v20 }
  0xc3   : > { %424 = vrot.lane.b32.xlu0 %v406_v19, %s797_s25  ;;  %422 = vrot.lane.b32.xlu1 %v405_v21, %s797_s25  ;;  %v361_v22 = vpop.permute.xlu1 %360 }
  0xc4   : > { %v382_v23 = vsel %vm378_vm4, 0.0, %v361_v22 }
  0xc5   : > { %v391_v24 = vsel %vm387_vm5, %v382_v23, 0.0 }
  0xc6   : > { %v407_v25 = vmul.f32 0.375, %v391_v24  ;;  %v399_v43 = vmul.f32 0.125, %v391_v24 }
  0xc7   : > { %v363_v26 = vpop.permute.xlu0 %362 }
  0xc8   : > { %v383_v27 = vsel %vm378_vm4, 0.0, %v363_v26  ;;  %426 = vrot.lane.b32.xlu1 %v407_v25, %s797_s25 }
  0xc9   : > { %v392_v28 = vsel %vm387_vm5, %v383_v27, 0.0 }
  0xca   : > { %v408_v29 = vmul.f32 0.375, %v392_v28  ;;  %v365_v30 = vpop.permute.xlu1 %364  ;;  %v400_v44 = vmul.f32 0.125, %v392_v28 }
  0xcb   : > { %v384_v31 = vsel %vm378_vm4, 0.0, %v365_v30 }
  0xcc   : > { %428 = vrot.lane.b32.xlu0 %v408_v29, %s797_s25  ;;  %v393_v32 = vsel %vm387_vm5, %v384_v31, 0.0 }
  0xcd   : > { %v409_v33 = vmul.f32 0.375, %v393_v32  ;;  %v401_v45 = vmul.f32 0.125, %v393_v32 }
  0xcf   : > { %430 = vrot.lane.b32.xlu1 %v409_v33, %s797_s25 }
  0xd0   : > { %v367_v34 = vpop.permute.xlu0 %366  ;;  %v369_v35 = vpop.permute.xlu1 %368 }
  0xd1   : > { %v385_v36 = vsel %vm378_vm4, 0.0, %v367_v34  ;;  %v386_v8 = vsel %vm378_vm4, 0.0, %v369_v35 }
  0xd2   : > { %v394_v11 = vsel %vm387_vm5, %v385_v36, 0.0  ;;  %v395_v37 = vsel %vm387_vm5, %v386_v8, 0.0 }
  0xd3   : > { %v410_v38 = vmul.f32 0.375, %v394_v11  ;;  %v411_v39 = vmul.f32 0.375, %v395_v37  ;;  %v402_v46 = vmul.f32 0.125, %v394_v11  ;;  %v403_v47 = vmul.f32 0.125, %v395_v37 }
  0xd5   : > { %432 = vrot.lane.b32.xlu0 %v410_v38, %s797_s25  ;;  %434 = vrot.lane.b32.xlu1 %v411_v39, %s797_s25 }
  0xd9   : > { %452 = vrot.lane.b32.xlu0 %v404_v14, %s798_s27  ;;  %454 = vrot.lane.b32.xlu1 %v405_v21, %s798_s27 }
  0xdd   : > { %456 = vrot.lane.b32.xlu0 %v406_v19, %s798_s27  ;;  %458 = vrot.lane.b32.xlu1 %v407_v25, %s798_s27 }
  0xe1   : > { %460 = vrot.lane.b32.xlu0 %v408_v29, %s798_s27  ;;  %462 = vrot.lane.b32.xlu1 %v409_v33, %s798_s27 }
  0xe5   : > { %464 = vrot.lane.b32.xlu0 %v410_v38, %s798_s27  ;;  %466 = vrot.lane.b32.xlu1 %v411_v39, %s798_s27 }
  0xe9   : > { %492 = vrot.lane.b32.xlu0 %v396_v40, %s799_s28  ;;  %494 = vrot.lane.b32.xlu1 %v397_v41, %s799_s28 }
  0xed   : > { %496 = vrot.lane.b32.xlu0 %v398_v42, %s799_s28  ;;  %498 = vrot.lane.b32.xlu1 %v399_v43, %s799_s28 }
  0xf1   : > { %500 = vrot.lane.b32.xlu0 %v400_v44, %s799_s28  ;;  %502 = vrot.lane.b32.xlu1 %v401_v45, %s799_s28 }
  0xf5   : > { %504 = vrot.lane.b32.xlu0 %v402_v46, %s799_s28  ;;  %506 = vrot.lane.b32.xlu1 %v403_v47, %s799_s28 }
 0x131   : > { %v421_v48 = vpop.permute.xlu0 %420 }
 0x132   : > { %v444_v0 = vadd.f32 %v421_v48, %v396_v40 }
 0x135   : > { %v423_v49 = vpop.permute.xlu1 %422  ;;  %v425_v50 = vpop.permute.xlu0 %424 }
 0x136   : > { %v445_v1 = vadd.f32 %v423_v49, %v397_v41  ;;  %v446_v6 = vadd.f32 %v425_v50, %v398_v42 }
 0x13a   : > { %v427_v51 = vpop.permute.xlu1 %426 }
 0x13b   : > { %v447_v7 = vadd.f32 %v427_v51, %v399_v43 }
 0x13e   : > { %v429_v52 = vpop.permute.xlu0 %428 }
 0x13f   : > { %v448_v16 = vadd.f32 %v429_v52, %v400_v44 }
 0x141   : > { %v431_v53 = vpop.permute.xlu1 %430 }
 0x142   : > { %v449_v17 = vadd.f32 %v431_v53, %v401_v45 }
 0x147   : > { %v433_v54 = vpop.permute.xlu0 %432  ;;  %v435_v55 = vpop.permute.xlu1 %434 }
 0x148   : > { %v450_v24 = vadd.f32 %v433_v54, %v402_v46  ;;  %v451_v25 = vadd.f32 %v435_v55, %v403_v47 }
 0x14b   : > { %v453_v56 = vpop.permute.xlu0 %452  ;;  %v455_v57 = vpop.permute.xlu1 %454 }
 0x14c   : > { %v476_v2 = vadd.f32 %v453_v56, %v444_v0  ;;  %v477_v3 = vadd.f32 %v455_v57, %v445_v1 }
 0x14f   : > { %v457_v58 = vpop.permute.xlu0 %456  ;;  %v459_v59 = vpop.permute.xlu1 %458 }
 0x150   : > { %v478_v13 = vadd.f32 %v457_v58, %v446_v6  ;;  %v479_v14 = vadd.f32 %v459_v59, %v447_v7 }
 0x153   : > { %v461_v60 = vpop.permute.xlu0 %460  ;;  %v463_v61 = vpop.permute.xlu1 %462 }
 0x154   : > { %v480_v20 = vadd.f32 %v461_v60, %v448_v16  ;;  %v481_v21 = vadd.f32 %v463_v61, %v449_v17 }
 0x157   : > { %v465_v62 = vpop.permute.xlu0 %464  ;;  %v467_v63 = vpop.permute.xlu1 %466 }
 0x158   : > { %v482_v28 = vadd.f32 %v465_v62, %v450_v24  ;;  %v483_v29 = vadd.f32 %v467_v63, %v451_v25 }
 0x15b   : > { %v493_v4 = vpop.permute.xlu0 %492  ;;  %v495_v5 = vpop.permute.xlu1 %494 }
 0x15c   : > { %v516_v9 = vadd.f32 %v493_v4, %v476_v2  ;;  %v517_v12 = vadd.f32 %v495_v5, %v477_v3 }
 0x15e   : > { %525 = vst.msk [vmem:[%s1014_s29] sm:$0xff] %vm524_vm6, %v516_v9  ;;  %526 = vst.msk [vmem:[%s1014_s29 + $0x8] sm:$0xff] %vm524_vm6, %v517_v12 }
 0x15f   : > { %v497_v10 = vpop.permute.xlu0 %496  ;;  %v499_v15 = vpop.permute.xlu1 %498 }
 0x160   : > { %v518_v18 = vadd.f32 %v497_v10, %v478_v13  ;;  %v519_v19 = vadd.f32 %v499_v15, %v479_v14 }
 0x162   : > { %527 = vst.msk [vmem:[%s1014_s29 + $0x10] sm:$0xff] %vm524_vm6, %v518_v18  ;;  %528 = vst.msk [vmem:[%s1014_s29 + $0x18] sm:$0xff] %vm524_vm6, %v519_v19 }
 0x163   : > { %v501_v22 = vpop.permute.xlu0 %500  ;;  %v503_v23 = vpop.permute.xlu1 %502 }
 0x164   : > { %v520_v26 = vadd.f32 %v501_v22, %v480_v20  ;;  %v521_v27 = vadd.f32 %v503_v23, %v481_v21 }
 0x166   : > { %529 = vst.msk [vmem:[%s1014_s29 + $0x20] sm:$0xff] %vm524_vm6, %v520_v26  ;;  %530 = vst.msk [vmem:[%s1014_s29 + $0x28] sm:$0xff] %vm524_vm6, %v521_v27 }
 0x167   : > { %v505_v30 = vpop.permute.xlu0 %504  ;;  %v507_v31 = vpop.permute.xlu1 %506 }
 0x168   : > { %v522_v32 = vadd.f32 %v505_v30, %v482_v28  ;;  %v523_v33 = vadd.f32 %v507_v31, %v483_v29 }
 0x16a   : > { %531 = vst.msk [vmem:[%s1014_s29 + $0x30] sm:$0xff] %vm524_vm6, %v522_v32  ;;  %532 = vst.msk [vmem:[%s1014_s29 + $0x38] sm:$0xff] %vm524_vm6, %v523_v33 }
 0x16b   : > { %738 = shalt.err (!%p735_p2)
}
 0x16c   : > { %s739_s21 = scalar_lea.hbm %s1033_s11, 1024  ;;  %s743_s26 = scalar_lea.hbm %s1084_s1, 2048 }
 0x16d   : > { %p740_p4 = scmp.ne.s32.totalorder %s1033_s11, %s739_s21  ;;  %p744_p9 = scmp.lt.u32.totalorder %s1033_s11, %s1084_s1 }
 0x16e   : > { %p745_p1 = scmp.lt.u32.totalorder %s743_s26, %s739_s21  ;;  %p747_p6 = scmp.lt.u32.totalorder %s739_s21, %s1033_s11 }
 0x16f   : > { %p741_p5 = pnand %p740_p4, %p1091_p11 }
 0x170   : > { %p746_p3 = por %p745_p1, %p744_p9 }
 0x171   : > { %p742_p7 = pneg %p741_p5 }
 0x172   : > { %p748_p12 = por %p747_p6, %p746_p3 }
 0x174   : > { %p749_p13 = pnand %p748_p12, %p742_p7 }
 0x176   : > { %752 = shalt.err (!%p749_p13)
}
 0x177   : > { %s801_s25 = smov 128   ;;  %s802_s27 = smov 8  }
 0x178   : > { %643 = dma.vmem_to_hbm [thread:$0]  (%p1091_p11), %s1035_s3, 1024, %s1033_s11, %s534_s10, %s801_s25, %s801_s25, %s802_s27  }
 0x179 PF: > { %s563_s28 = sand.u32 1, %s779_s6   ;;  %p1092_p8 = scmp.ne.s32.totalorder %s1089_s19, 0 }
 0x17a   : > { %p1093_p10 = scmp.ge.s32.totalorder %s791_s9, 2  ;;  %s564_s29 = scalar_lea.sflag [#allocation4], %s563_s28 }
 0x17c   : > { %p650_p0 = pnand %p1093_p10, %p1092_p8 }
 0x17e   : > { %774 = dma.done.wait (!%p650_p0), %s564_s29, 1024  }
 0x17f   : > { %776 = vsyncadd (!%p650_p0), %s564_s29, 4294966272  ;;  %p14_p2 = scmp.ge.s32.totalorder %s838_s12, 4   ;;  %s1094_s6 = smov %s783_s7 }
 0x180   : > { %s1095_s7 = smov %s787_s8  ;;  %s1096_s8 = smov %s850_s15 }
 0x181   : > { %s1097_s9 = smov %s838_s12  ;;  %16 = sbr.rel (!%p14_p2) target bundleno = 5 (0x5), region = 69 }
 0x188   :  { %569 = vsyncpa [#allocation3], 1 }
 0x189   :  { %571 = vsyncpa [#allocation3 + $0x1], 1 }
 0x18a   :  { %572 = vsyncpa [#allocation4], 1 }
 0x18b   :  { %574 = vsyncpa [#allocation4 + $0x1], 1 }

</bundles_post_ra>
